<compile_context>
chip_gen: v5e
topology: v5e:2x2
jax: 0.10.0
libtpu: 0.0.40
codegen_flags: <defaults>
</compile_context>

<pallas_src>
import jax
import jax.numpy as jnp
import numpy as np
from jax import lax
from jax.experimental import pallas as pl
from jax.experimental.pallas import tpu as pltpu


# Budget (bytes) for the double-buffered x tile in VMEM.  Leaves ample headroom under
# v7x's 64 MiB physical VMEM once the (tb, 2) output tile (+lane padding) and the tiny
# grid-invariant weight/bias blocks are added.
_X_VMEM_BUDGET_BYTES = 40 * 1024 * 1024


def _nsp_head_kernel(x_ref, w_ref, b_ref, out_ref):
    # x_ref: (TB, H) input tile, w_ref: (2, H) Linear weight in PyTorch layout,
    # b_ref: (1, 2) bias (f32), out_ref: (TB, 2) logits tile.
    #
    # Contract over H on both operands (x @ W.T) directly on the MXU -- no transpose
    # of the weight is materialized anywhere.  f32 accumulation.
    acc = lax.dot_general(
        x_ref[...],
        w_ref[...],
        dimension_numbers=(((1,), (1,)), ((), ())),
        preferred_element_type=jnp.float32,
    )
    out_ref[...] = (acc + b_ref[...]).astype(out_ref.dtype)


def bert_only_nsp_head(pooled_output, weight, bias, *, block_b=2048, compute_dtype=None):
    """pooled_output: [B, H]; weight: [2, H] (PyTorch Linear layout); bias: [2].

    compute_dtype: optional streaming dtype for x / W (e.g. jnp.bfloat16) to halve HBM
    traffic; accumulation is always f32 and the output keeps pooled_output's dtype.

    Returns seq_relationship_score: [B, 2].
    """
    b, h = pooled_output.shape
    n_out, h_w = weight.shape
    assert h == h_w, "weight in_features must match hidden size"

    out_dtype = pooled_output.dtype
    x = pooled_output
    w = weight
    if compute_dtype is not None and compute_dtype != x.dtype:
        x = x.astype(compute_dtype)
        w = w.astype(compute_dtype)
    b2d = bias.reshape(1, n_out).astype(jnp.float32)

    x_itemsize = jnp.dtype(x.dtype).itemsize
    w_itemsize = jnp.dtype(w.dtype).itemsize
    out_itemsize = jnp.dtype(out_dtype).itemsize
    h_pad = pl.cdiv(h, 128) * 128          # lane-padded H as it lands in VMEM

    # ---- batch tile selection (HBM-bound: big tiles, few grid steps) ----
    bp8 = max(8, pl.cdiv(b, 8) * 8)        # batch rounded up to the sublane quantum
    # Largest tb whose double-buffered x tile fits the VMEM budget.
    tb_cap = max(8, (_X_VMEM_BUDGET_BYTES // (2 * h_pad * x_itemsize)) // 8 * 8)
    tb = min(block_b, tb_cap, bp8)
    # Guarantee >= 2 grid steps whenever the batch allows it: lets v7x's two
    # TensorCores share the "parallel" batch axis and restores DMA/compute overlap.
    min_steps = 2
    if bp8 // tb < min_steps and bp8 >= min_steps * 8:
        tb = max(8, (pl.cdiv(bp8, min_steps) // 8) * 8)

    bp = pl.cdiv(b, tb) * tb               # pad batch so the grid divides evenly
    if bp != b:
        x = jnp.pad(x, ((0, bp - b), (0, 0)))
    grid = (bp // tb,)

    # ---- scoped-VMEM limit from the actual footprint (v5e default is only 16 MiB;
    #      v7x physical is 64 MiB, so cap well below it) ----
    vmem_needed = (
        2 * tb * h_pad * x_itemsize        # double-buffered x tiles
        + 2 * tb * 128 * out_itemsize      # double-buffered (tb, 2) out tiles (lane pad)
        + 2 * 8 * h_pad * w_itemsize       # (2, H) weight, sublane-padded to 8
        + 2 * 8 * 128 * 4                  # (1, 2) bias, padded to (8, 128)
    )
    vmem_limit = int(min(max(vmem_needed + (4 << 20), 16 * 1024 * 1024),
                         56 * 1024 * 1024))

    out = pl.pallas_call(
        _nsp_head_kernel,
        out_shape=jax.ShapeDtypeStruct((bp, n_out), out_dtype),
        grid_spec=pltpu.PrefetchScalarGridSpec(
            num_scalar_prefetch=0,
            grid=grid,
            in_specs=[
                pl.BlockSpec((tb, h), lambda i: (i, 0)),        # pooled_output tile
                pl.BlockSpec((n_out, h), lambda i: (0, 0)),     # weight (2, H), VMEM-resident
                pl.BlockSpec((1, n_out), lambda i: (0, 0)),     # bias, VMEM-resident
            ],
            out_specs=pl.BlockSpec((tb, n_out), lambda i: (i, 0)),
        ),
        compiler_params=pltpu.CompilerParams(
            dimension_semantics=("parallel",),
            vmem_limit_bytes=vmem_limit,
        ),
    )(x, w, b2d)
    return out[:b]


def _reference(pooled_output, weight, bias):
    return pooled_output @ weight.T + bias


if __name__ == "__main__":
    # Small synthetic config consistent with the module: batch=2, hidden=32, 2 labels.
    key = jax.random.PRNGKey(0)
    k1, k2, k3 = jax.random.split(key, 3)
    batch, hidden, n_labels = 2, 32, 2

    pooled_output = jax.random.normal(k1, (batch, hidden), jnp.float32)
    weight = 0.02 * jax.random.normal(k2, (n_labels, hidden), jnp.float32)  # nn.Linear [out, in]
    bias = 0.02 * jax.random.normal(k3, (n_labels,), jnp.float32)

    # f32 path, tight tolerance.
    out = jax.block_until_ready(bert_only_nsp_head(pooled_output, weight, bias))
    ref = _reference(pooled_output, weight, bias)
    np.testing.assert_allclose(np.asarray(out), np.asarray(ref), rtol=1e-5, atol=1e-5)

    # bf16 streaming path (halves HBM traffic for x); f32 accumulation, looser tolerance.
    out_bf16 = jax.block_until_ready(
        bert_only_nsp_head(pooled_output, weight, bias, compute_dtype=jnp.bfloat16))
    np.testing.assert_allclose(np.asarray(out_bf16), np.asarray(ref), rtol=2e-2, atol=2e-2)

    # Multi-tile grid path (batch not a multiple of 8, >1 grid step -> exercises
    # padding, the "parallel" batch axis and the pipelined DMA).
    x_big = jax.random.normal(jax.random.PRNGKey(1), (37, hidden), jnp.float32)
    out_big = jax.block_until_ready(bert_only_nsp_head(x_big, weight, bias))
    np.testing.assert_allclose(np.asarray(out_big),
                               np.asarray(_reference(x_big, weight, bias)),
                               rtol=1e-5, atol=1e-5)

    print("KERNEL_OK")
</pallas_src>

<mosaic_0001>
module attributes {stable_mosaic.version = 11 : i64} {
  func.func @_nsp_head_kernel(%arg0: i32, %arg1: memref<8x32xf32, #tpu.memory_space<vmem>>, %arg2: memref<2x32xf32, #tpu.memory_space<vmem>>, %arg3: memref<1x2xf32, #tpu.memory_space<vmem>>, %arg4: memref<8x2xf32, #tpu.memory_space<vmem>>) attributes {dimension_semantics = [#tpu.dimension_semantics<parallel>], iteration_bounds = array<i64: 1>, scalar_prefetch = 0 : i64, scratch_operands = 0 : i64, tpu.core_type = #tpu.core_type<tc>, window_params = [{transform_indices = @transform_0, window_bounds = array<i64: 8, 32>}, {pipeline_mode = #tpu.pipeline_mode<synchronous>, transform_indices = @transform_1, window_bounds = array<i64: 2, 32>}, {pipeline_mode = #tpu.pipeline_mode<synchronous>, transform_indices = @transform_2, window_bounds = array<i64: 1, 2>}, {transform_indices = @transform_3, window_bounds = array<i64: 8, 2>}]} {
    %c0 = arith.constant 0 : index
    %c0_0 = arith.constant 0 : index
    %0 = vector.load %arg1[%c0, %c0_0] : memref<8x32xf32, #tpu.memory_space<vmem>>, vector<8x32xf32>
    %c0_1 = arith.constant 0 : index
    %c0_2 = arith.constant 0 : index
    %1 = vector.load %arg2[%c0_1, %c0_2] : memref<2x32xf32, #tpu.memory_space<vmem>>, vector<2x32xf32>
    %cst = arith.constant dense<0.000000e+00> : vector<8x2xf32>
    %2 = tpu.matmul %0, %1, %cst {dimension_numbers = #tpu.dot_dimension_numbers<[1], [1], [0], [0], [0, 0, 1, 0], [], []>} : vector<8x32xf32>, vector<2x32xf32>, vector<8x2xf32> -> vector<8x2xf32>
    %c0_3 = arith.constant 0 : index
    %c0_4 = arith.constant 0 : index
    %3 = vector.load %arg3[%c0_3, %c0_4] : memref<1x2xf32, #tpu.memory_space<vmem>>, vector<1x2xf32>
    %4 = vector.broadcast %3 : vector<1x2xf32> to vector<8x2xf32>
    %5 = arith.addf %2, %4 : vector<8x2xf32>
    %c0_5 = arith.constant 0 : index
    %c0_6 = arith.constant 0 : index
    %6 = vector.load %arg4[%c0_5, %c0_6] : memref<8x2xf32, #tpu.memory_space<vmem>>, vector<8x2xf32>
    tpu.vector_store %arg4[%c0_5, %c0_6], %5 {strides = array<i32>} : memref<8x2xf32, #tpu.memory_space<vmem>>, vector<8x2xf32>,
    return
  }
  func.func @transform_0(%arg0: i32) -> (i32, i32) {
    %c0_i32 = arith.constant 0 : i32
    %c0_i32_0 = arith.constant 0 : i32
    return %arg0, %c0_i32 : i32, i32
  }
  func.func @transform_1(%arg0: i32) -> (i32, i32) {
    %c0_i32 = arith.constant 0 : i32
    %c0_i32_0 = arith.constant 0 : i32
    %c0_i32_1 = arith.constant 0 : i32
    return %c0_i32, %c0_i32_0 : i32, i32
  }
  func.func @transform_2(%arg0: i32) -> (i32, i32) {
    %c0_i32 = arith.constant 0 : i32
    %c0_i32_0 = arith.constant 0 : i32
    %c0_i32_1 = arith.constant 0 : i32
    return %c0_i32, %c0_i32_0 : i32, i32
  }
  func.func @transform_3(%arg0: i32) -> (i32, i32) {
    %c0_i32 = arith.constant 0 : i32
    %c0_i32_0 = arith.constant 0 : i32
    return %arg0, %c0_i32 : i32, i32
  }
}

</mosaic_0001>

<bundles_post_ra>
// kernel: tpu_custom_call.1
= control target key start
LH: loop header
LB: loop body
LE: loop exit
PB: predicated region body
PF: predicated region fallthrough
CT: control target
= control target key end

     0   :  { %8 = vsyncpa [#allocation3], 0  ;;  %s174_s0 = inlined_call_operand.hbm [shape: f32[8,32], index: 0, kind: input, shape index: {}]   ;;  %s175_s1 = inlined_call_operand.hbm [shape: f32[2,32], index: 1, kind: input, shape index: {}]   ;;  %s176_s2 = inlined_call_operand.vmem [shape: f32[1,2], index: 2, kind: input, shape index: {}]   ;;  %s177_s3 = inlined_call_operand.vmem [shape: f32[8,2], index: 3, kind: output, shape index: {}]  }
   0x1   :  { %s15_s14 = sshll.u32 %s174_s0, 4  ;;  %s16_s14 = int_to_ptr.hbm [resolvable:$true] %s15_s14 }
   0x2   :  { %9 = vsyncpa [#allocation5], 0  ;;  %s140_s15 = smov [#allocation2]   ;;  %s26_s19 = sshll.u32 %s175_s1, 4  ;;  %s27_s19 = int_to_ptr.hbm [resolvable:$true] %s26_s19 }
   0x3   :  { %s17_s16 = sshll.u32 %s140_s15, 4  ;;  %s141_s20 = smov [#allocation4]   ;;  %s18_s16 = int_to_ptr.vmem [resolvable:$true] %s17_s16 }
   0x4   :  { %20 = dma.hbm_to_vmem [thread:$0]  %s16_s14, 128, %s18_s16, [#allocation3]  }
   0x5   :  { %s28_s21 = sshll.u32 %s141_s20, 4  ;;  %s29_s21 = int_to_ptr.vmem [resolvable:$true] %s28_s21 }
   0x6   :  { %31 = dma.hbm_to_vmem [thread:$0]  %s27_s19, 32, %s29_s21, [#allocation5]  }
   0x7   :  { %136 = dma.done.wait [#allocation3], 128  }
   0x8   :  { %137 = vsyncadd [#allocation3], 4294967168 }
   0x9   :  { %138 = dma.done.wait [#allocation5], 32  }
   0xa   :  { %139 = vsyncadd [#allocation5], 4294967264  ;;  %vm48_vm0 = vcmask 261120   ;;  %v43_v0 = vld [vmem:[#allocation4] sm:$0x3]  ;;  %v42_v1 = vld [vmem:[#allocation2] sm:$0xff] }
   0xb   :  { %83 = vmatpush.xpose.msk.msra.mxu0 %vm48_vm0, %v43_v0  ;;  %v87_v2 = vld [vmem:[%s176_s2] ss:$0 sm:$0xff]  ;;  %vm75_vm1 = vcmask 15360  }
   0xe   :  { %84 = vmatmul.msk.f32.vlgmr.msra.gmra.mxu0 %vm48_vm0, %v42_v1 }
  0x8b   :  { %v72_v3 = vpop.f32.mrf.mxu0 }
  0x8c   :  { %v73_v4 = vadd.f32 %v87_v2, %v72_v3 }
  0x8e   :  { %76 = vst.msk [vmem:[%s177_s3] sm:$0xff] %vm75_vm1, %v73_v4 }
  0x8f   :  { %81 = vsyncpa [#allocation3], 1 }
  0x90   :  { %82 = vsyncpa [#allocation5], 1 }

</bundles_post_ra>
